<compile_context>
chip_gen: v7x
topology: tpu7x:2x2x1
jax: 0.10.0
libtpu: 0.0.40
codegen_flags: <defaults>
</compile_context>

<pallas_src>
import math
import functools

import jax
import jax.numpy as jnp
from jax.experimental import pallas as pl
from jax.experimental.pallas import tpu as pltpu


def _transformer_kernel(x_ref, mask_ref, w_ref, b_ref, o_ref, *,
                        num_head, head_dim, hidden):
    Bb, S, D = x_ref.shape                     # one block = Bb batch elements
    H, hd = num_head, head_dim
    QKVW = 3 * H * hd
    R = Bb * S                                 # rows processed per grid step

    x = x_ref[...].astype(jnp.float32).reshape(R, D)          # (R, D) f32
    mask = mask_ref[...].astype(jnp.float32)                  # (Bb, 1, S)
    neg_bias = 1e6 * (1.0 - mask)                             # (Bb, 1, S)

    # ---- static slices of the packed operands (offsets are compile-time constants) ----
    # weight blob rows: [Wqkv (D) | Wo (H*hd) | W1 (D) | W2 (hidden)], bf16
    r = 0
    w_qkv = w_ref[r:r + D, 0:QKVW]; r += D          # (D, 3*H*hd), Wq pre-scaled by 1/sqrt(hd)
    w_o   = w_ref[r:r + H * hd, 0:D]; r += H * hd   # (H*hd, D)
    w_1   = w_ref[r:r + D, 0:hidden]; r += D        # (D, hidden)
    w_2   = w_ref[r:r + hidden, 0:D]                # (hidden, D)
    # bias blob rows: ln1_g, ln1_b, bqkv, bo, ln2_g, ln2_b, b1, b2  (f32)
    ln1_g = b_ref[0:1, 0:D];     ln1_b = b_ref[1:2, 0:D]
    b_qkv = b_ref[2:3, 0:QKVW]
    b_o   = b_ref[3:4, 0:D]
    ln2_g = b_ref[4:5, 0:D];     ln2_b = b_ref[5:6, 0:D]
    b_1   = b_ref[6:7, 0:hidden]
    b_2   = b_ref[7:8, 0:D]

    def layer_norm(v, g, b):
        mu = jnp.mean(v, axis=-1, keepdims=True)
        var = jnp.mean((v - mu) ** 2, axis=-1, keepdims=True)
        return (v - mu) * jax.lax.rsqrt(var + 1e-5) * g + b

    # ---- sublayer 1: multi-head attention on LN1(X) ----
    h = layer_norm(x, ln1_g, ln1_b).astype(jnp.bfloat16)      # (R, D) bf16

    # fused Q/K/V projection: one wide matmul (scale + bq already folded into Wq/bq)
    qkv = jnp.dot(h, w_qkv, preferred_element_type=jnp.float32) + b_qkv   # (R, 3*H*hd) f32

    ctxs = []
    for hh in range(H):   # static unroll over heads; projections already fused above
        q = qkv[:, hh * hd:(hh + 1) * hd].reshape(Bb, S, hd).astype(jnp.bfloat16)
        k = qkv[:, (H + hh) * hd:(H + hh + 1) * hd].reshape(Bb, S, hd).astype(jnp.bfloat16)
        v = qkv[:, (2 * H + hh) * hd:(2 * H + hh + 1) * hd].reshape(Bb, S, hd).astype(jnp.bfloat16)

        # scores: contract head_dim directly (no explicit transpose); scale is pre-folded
        s = jnp.einsum("bqd,bkd->bqk", q, k,
                       preferred_element_type=jnp.float32)    # (Bb, S, S) f32
        s = s - neg_bias                                      # broadcast over queries
        m = jnp.max(s, axis=-1, keepdims=True)
        p = jnp.exp(s - m)
        p = p * pl.reciprocal(jnp.sum(p, axis=-1, keepdims=True), approx=True)

        ctx = jnp.einsum("bqk,bkd->bqd", p.astype(jnp.bfloat16), v,
                         preferred_element_type=jnp.float32)  # (Bb, S, hd)
        ctxs.append(ctx.reshape(R, hd))

    # head concat (cheap lane select) + single output projection
    ctx_all = jnp.concatenate(ctxs, axis=-1).astype(jnp.bfloat16)         # (R, H*hd)
    attn = jnp.dot(ctx_all, w_o, preferred_element_type=jnp.float32) + b_o
    x = attn + x                                   # residual (dropout = identity)

    # ---- sublayer 2: MLP on LN2(X) ----
    h2 = layer_norm(x, ln2_g, ln2_b).astype(jnp.bfloat16)
    hid = jnp.dot(h2, w_1, preferred_element_type=jnp.float32) + b_1
    hid = jnp.maximum(hid, 0.0).astype(jnp.bfloat16)          # ReLU
    mlp = jnp.dot(hid, w_2, preferred_element_type=jnp.float32) + b_2

    y = (mlp + x).astype(o_ref.dtype)              # (R, D)
    # lane-dense store: build a (Bb, S*D) slab via lane concat (no minor-dim reshape needed)
    y3 = y.reshape(Bb, S, D)                       # leading-dim split only (layout trivial)
    o_ref[...] = jnp.concatenate([y3[:, s, :] for s in range(S)], axis=-1)


def prepare_params(params, *, num_head, head_dim):
    """One-time weight prep (hoisted out of the per-call path): fold the 1/sqrt(hd) softmax
    scale into Wq/bq, fuse Q/K/V weights, and pack everything into one bf16 weight blob and
    one f32 bias/LN blob so the kernel has only 2 constant operands."""
    D = params["wq"].shape[0]
    hidden = params["w1"].shape[1]
    H, hd = num_head, head_dim
    QKVW = 3 * H * hd
    scale = 1.0 / math.sqrt(hd)

    wqkv = jnp.concatenate([params["wq"] * scale, params["wk"], params["wv"]], axis=1)  # (D, QKVW)
    wo, w1, w2 = params["wo"], params["w1"], params["w2"]

    wcols = max(QKVW, D, hidden)

    def pad_cols(w):
        return jnp.pad(w, ((0, 0), (0, wcols - w.shape[1])))

    w_blob = jnp.concatenate(
        [pad_cols(wqkv), pad_cols(wo), pad_cols(w1), pad_cols(w2)], axis=0
    ).astype(jnp.bfloat16)                                     # (D + H*hd + D + hidden, wcols)

    def pad_row(v):
        v = jnp.asarray(v, jnp.float32).reshape(1, -1)
        return jnp.pad(v, ((0, 0), (0, wcols - v.shape[1])))

    bqkv = jnp.concatenate([params["bq"].reshape(-1) * scale,
                            params["bk"].reshape(-1),
                            params["bv"].reshape(-1)])
    b_blob = jnp.concatenate([
        pad_row(params["ln1_g"]), pad_row(params["ln1_b"]),
        pad_row(bqkv),
        pad_row(params["bo"]), pad_row(params["ln2_g"]), pad_row(params["ln2_b"]),
        pad_row(params["b1"]), pad_row(params["b2"]),
    ], axis=0)                                                 # (8, wcols) f32

    return {"w_blob": w_blob, "b_blob": b_blob,
            "embed_dim": D, "hidden": hidden, "num_head": H, "head_dim": hd}


def transformer_forward(x, mask, prepared, *, batch_block=None):
    """x: (B, S, D) f32; mask: (B, 1, S) f32 of {0,1}; prepared: output of prepare_params."""
    B, S, D = x.shape
    H, hd = prepared["num_head"], prepared["head_dim"]
    hidden = prepared["hidden"]
    assert D == prepared["embed_dim"]

    if batch_block is None:
        # Single grid step by default (v5e/v6e: one TensorCore, so a split is pure overhead).
        # Only split for the 2 TensorCores of v7x when each block has substantial work and the
        # half-batch keeps the 2-D lane-dense output block sublane-aligned.
        if B % 2 == 0 and (B // 2) % 8 == 0 and B * S >= 512:
            batch_block = B // 2
        else:
            batch_block = B
    assert B % batch_block == 0, "B must be divisible by batch_block"
    grid = (B // batch_block,)

    w_blob, b_blob = prepared["w_blob"], prepared["b_blob"]

    kernel = functools.partial(_transformer_kernel,
                               num_head=H, head_dim=hd, hidden=hidden)

    out_flat = pl.pallas_call(
        kernel,
        out_shape=jax.ShapeDtypeStruct((B, S * D), x.dtype),   # lane-dense output slab
        grid_spec=pltpu.PrefetchScalarGridSpec(
            num_scalar_prefetch=0,
            grid=grid,
            in_specs=[
                pl.BlockSpec((batch_block, S, D), lambda i: (i, 0, 0)),   # x
                pl.BlockSpec((batch_block, 1, S), lambda i: (i, 0, 0)),   # mask
                pl.BlockSpec(w_blob.shape, lambda i: (0, 0)),             # packed bf16 weights
                pl.BlockSpec(b_blob.shape, lambda i: (0, 0)),             # packed f32 biases/LN
            ],
            out_specs=pl.BlockSpec((batch_block, S * D), lambda i: (i, 0)),
        ),
        compiler_params=pltpu.CompilerParams(dimension_semantics=("parallel",)),
    )(x, mask, w_blob, b_blob)
    return out_flat.reshape(B, S, D)                           # free relayout outside the kernel


def _reference_forward(x, mask, params, *, num_head, head_dim):
    """Pure-JAX f32 reference for correctness checking."""
    def ln(v, g, b):
        mu = jnp.mean(v, axis=-1, keepdims=True)
        var = jnp.mean((v - mu) ** 2, axis=-1, keepdims=True)
        return (v - mu) / jnp.sqrt(var + 1e-5) * g + b

    B, S, D = x.shape
    h = ln(x, params["ln1_g"], params["ln1_b"])
    q = h @ params["wq"] + params["bq"]
    k = h @ params["wk"] + params["bk"]
    v = h @ params["wv"] + params["bv"]
    q = q.reshape(B, S, num_head, head_dim).transpose(0, 2, 1, 3)
    k = k.reshape(B, S, num_head, head_dim).transpose(0, 2, 1, 3)
    v = v.reshape(B, S, num_head, head_dim).transpose(0, 2, 1, 3)
    s = jnp.einsum("bhqd,bhkd->bhqk", q, k) / math.sqrt(head_dim)
    s = s - 1e6 * (1.0 - mask[:, :, None, :])          # mask (B,1,S) -> (B,1,1,S)
    a = jax.nn.softmax(s, axis=-1)
    ctx = jnp.einsum("bhqk,bhkd->bhqd", a, v).transpose(0, 2, 1, 3).reshape(B, S, -1)
    attn_out = ctx @ params["wo"] + params["bo"]
    x = attn_out + x
    h2 = ln(x, params["ln2_g"], params["ln2_b"])
    mlp = jnp.maximum(h2 @ params["w1"] + params["b1"], 0.0) @ params["w2"] + params["b2"]
    return mlp + x


if __name__ == "__main__":
    # config: embedding_dim=32, num_head=2, head_dim=16, transformer_hidden_dim=64, dropout (eval)
    B, S, D = 2, 8, 32
    num_head, head_dim = 2, 16
    HD = num_head * head_dim
    hidden = 64

    key = jax.random.PRNGKey(0)
    keys = jax.random.split(key, 10)

    params = {
        "ln1_g": jnp.ones((1, D), jnp.float32),
        "ln1_b": jnp.zeros((1, D), jnp.float32),
        "wq": 0.02 * jax.random.normal(keys[0], (D, HD), jnp.float32),
        "bq": jnp.zeros((1, HD), jnp.float32),
        "wk": 0.02 * jax.random.normal(keys[1], (D, HD), jnp.float32),
        "bk": jnp.zeros((1, HD), jnp.float32),
        "wv": 0.02 * jax.random.normal(keys[2], (D, HD), jnp.float32),
        "bv": jnp.zeros((1, HD), jnp.float32),
        "wo": 0.02 * jax.random.normal(keys[3], (HD, D), jnp.float32),
        "bo": jnp.zeros((1, D), jnp.float32),
        "ln2_g": jnp.ones((1, D), jnp.float32),
        "ln2_b": jnp.zeros((1, D), jnp.float32),
        "w1": 0.02 * jax.random.normal(keys[4], (D, hidden), jnp.float32),
        "b1": jnp.zeros((1, hidden), jnp.float32),
        "w2": 0.02 * jax.random.normal(keys[5], (hidden, D), jnp.float32),
        "b2": jnp.zeros((1, D), jnp.float32),
    }

    x = jax.random.normal(keys[6], (B, S, D), jnp.float32)
    # mask: batch 0 fully valid, batch 1 has last two positions padded
    mask = jnp.ones((B, 1, S), jnp.float32)
    mask = mask.at[1, 0, -2:].set(0.0)

    # one-time weight prep (hoisted out of the per-call path)
    prepared = prepare_params(params, num_head=num_head, head_dim=head_dim)
    prepared = jax.tree_util.tree_map(
        lambda v: jax.block_until_ready(v) if isinstance(v, jax.Array) else v, prepared)

    out = transformer_forward(x, mask, prepared)
    out = jax.block_until_ready(out)

    ref = _reference_forward(x, mask, params, num_head=num_head, head_dim=head_dim)
    assert out.shape == (B, S, D)
    # bf16 MXU inputs + approx reciprocal -> loosened tolerance vs f32 reference
    assert jnp.max(jnp.abs(out - ref)) < 1e-2, "mismatch vs pure-JAX reference"

    print("KERNEL_OK")
</pallas_src>

<mosaic_0001>
module attributes {stable_mosaic.version = 11 : i64} {
  func.func @_transformer_kernel(%arg0: i32, %arg1: memref<2x8x32xf32, #tpu.memory_space<vmem>>, %arg2: memref<2x1x8xf32, #tpu.memory_space<vmem>>, %arg3: memref<160x96xbf16, #tpu.memory_space<vmem>>, %arg4: memref<8x96xf32, #tpu.memory_space<vmem>>, %arg5: memref<2x256xf32, #tpu.memory_space<vmem>>) attributes {dimension_semantics = [#tpu.dimension_semantics<parallel>], iteration_bounds = array<i64: 1>, scalar_prefetch = 0 : i64, scratch_operands = 0 : i64, tpu.core_type = #tpu.core_type<tc>, window_params = [{transform_indices = @transform_0, window_bounds = array<i64: 2, 8, 32>}, {transform_indices = @transform_1, window_bounds = array<i64: 2, 1, 8>}, {pipeline_mode = #tpu.pipeline_mode<synchronous>, transform_indices = @transform_2, window_bounds = array<i64: 160, 96>}, {pipeline_mode = #tpu.pipeline_mode<synchronous>, transform_indices = @transform_3, window_bounds = array<i64: 8, 96>}, {transform_indices = @transform_4, window_bounds = array<i64: 2, 256>}]} {
    %c0 = arith.constant 0 : index
    %c0_0 = arith.constant 0 : index
    %c0_1 = arith.constant 0 : index
    %0 = vector.load %arg1[%c0, %c0_0, %c0_1] : memref<2x8x32xf32, #tpu.memory_space<vmem>>, vector<2x8x32xf32>
    %1 = vector.shape_cast %0 : vector<2x8x32xf32> to vector<16x32xf32>
    %c0_2 = arith.constant 0 : index
    %c0_3 = arith.constant 0 : index
    %c0_4 = arith.constant 0 : index
    %2 = vector.load %arg2[%c0_2, %c0_3, %c0_4] : memref<2x1x8xf32, #tpu.memory_space<vmem>>, vector<2x1x8xf32>
    %cst = arith.constant 1.000000e+00 : f32
    %3 = vector.broadcast %cst : f32 to vector<2x1x8xf32>
    %4 = arith.subf %3, %2 : vector<2x1x8xf32>
    %cst_5 = arith.constant 1.000000e+06 : f32
    %5 = vector.broadcast %cst_5 : f32 to vector<2x1x8xf32>
    %6 = arith.mulf %5, %4 : vector<2x1x8xf32>
    %c0_6 = arith.constant 0 : index
    %c0_7 = arith.constant 0 : index
    %7 = vector.load %arg3[%c0_6, %c0_7] : memref<160x96xbf16, #tpu.memory_space<vmem>>, vector<32x96xbf16>
    %c32 = arith.constant 32 : index
    %c0_8 = arith.constant 0 : index
    %8 = vector.load %arg3[%c32, %c0_8] : memref<160x96xbf16, #tpu.memory_space<vmem>>, vector<32x32xbf16>
    %c64 = arith.constant 64 : index
    %c0_9 = arith.constant 0 : index
    %9 = vector.load %arg3[%c64, %c0_9] : memref<160x96xbf16, #tpu.memory_space<vmem>>, vector<32x64xbf16>
    %c96 = arith.constant 96 : index
    %c0_10 = arith.constant 0 : index
    %10 = vector.load %arg3[%c96, %c0_10] : memref<160x96xbf16, #tpu.memory_space<vmem>>, vector<64x32xbf16>
    %c0_11 = arith.constant 0 : index
    %c0_12 = arith.constant 0 : index
    %11 = vector.load %arg4[%c0_11, %c0_12] : memref<8x96xf32, #tpu.memory_space<vmem>>, vector<1x32xf32>
    %c1 = arith.constant 1 : index
    %c0_13 = arith.constant 0 : index
    %12 = vector.load %arg4[%c1, %c0_13] : memref<8x96xf32, #tpu.memory_space<vmem>>, vector<1x32xf32>
    %c2 = arith.constant 2 : index
    %c0_14 = arith.constant 0 : index
    %13 = vector.load %arg4[%c2, %c0_14] : memref<8x96xf32, #tpu.memory_space<vmem>>, vector<1x96xf32>
    %c3 = arith.constant 3 : index
    %c0_15 = arith.constant 0 : index
    %14 = vector.load %arg4[%c3, %c0_15] : memref<8x96xf32, #tpu.memory_space<vmem>>, vector<1x32xf32>
    %c4 = arith.constant 4 : index
    %c0_16 = arith.constant 0 : index
    %15 = vector.load %arg4[%c4, %c0_16] : memref<8x96xf32, #tpu.memory_space<vmem>>, vector<1x32xf32>
    %c5 = arith.constant 5 : index
    %c0_17 = arith.constant 0 : index
    %16 = vector.load %arg4[%c5, %c0_17] : memref<8x96xf32, #tpu.memory_space<vmem>>, vector<1x32xf32>
    %c6 = arith.constant 6 : index
    %c0_18 = arith.constant 0 : index
    %17 = vector.load %arg4[%c6, %c0_18] : memref<8x96xf32, #tpu.memory_space<vmem>>, vector<1x64xf32>
    %c7 = arith.constant 7 : index
    %c0_19 = arith.constant 0 : index
    %18 = vector.load %arg4[%c7, %c0_19] : memref<8x96xf32, #tpu.memory_space<vmem>>, vector<1x32xf32>
    %cst_20 = arith.constant dense<0.000000e+00> : vector<16xf32>
    %19 = vector.multi_reduction <add>, %1, %cst_20 [1] : vector<16x32xf32> to vector<16xf32>
    %20 = vector.shape_cast %19 : vector<16xf32> to vector<16x1xf32>
    %cst_21 = arith.constant 3.200000e+01 : f32
    %21 = vector.broadcast %cst_21 : f32 to vector<16x1xf32>
    %22 = arith.divf %20, %21 : vector<16x1xf32>
    %23 = vector.broadcast %22 : vector<16x1xf32> to vector<16x32xf32>
    %24 = arith.subf %1, %23 : vector<16x32xf32>
    %25 = arith.mulf %24, %24 : vector<16x32xf32>
    %cst_22 = arith.constant dense<0.000000e+00> : vector<16xf32>
    %26 = vector.multi_reduction <add>, %25, %cst_22 [1] : vector<16x32xf32> to vector<16xf32>
    %27 = vector.shape_cast %26 : vector<16xf32> to vector<16x1xf32>
    %cst_23 = arith.constant 3.200000e+01 : f32
    %28 = vector.broadcast %cst_23 : f32 to vector<16x1xf32>
    %29 = arith.divf %27, %28 : vector<16x1xf32>
    %30 = vector.broadcast %22 : vector<16x1xf32> to vector<16x32xf32>
    %31 = arith.subf %1, %30 : vector<16x32xf32>
    %cst_24 = arith.constant 9.99999974E-6 : f32
    %32 = vector.broadcast %cst_24 : f32 to vector<16x1xf32>
    %33 = arith.addf %29, %32 : vector<16x1xf32>
    %34 = math.rsqrt %33 : vector<16x1xf32>
    %35 = vector.broadcast %34 : vector<16x1xf32> to vector<16x32xf32>
    %36 = arith.mulf %31, %35 : vector<16x32xf32>
    %37 = vector.broadcast %11 : vector<1x32xf32> to vector<16x32xf32>
    %38 = arith.mulf %36, %37 : vector<16x32xf32>
    %39 = vector.broadcast %12 : vector<1x32xf32> to vector<16x32xf32>
    %40 = arith.addf %38, %39 : vector<16x32xf32>
    %41 = arith.truncf %40 : vector<16x32xf32> to vector<16x32xbf16>
    %cst_25 = arith.constant dense<0.000000e+00> : vector<16x96xf32>
    %42 = tpu.matmul %41, %7, %cst_25 {dimension_numbers = #tpu.dot_dimension_numbers<[1], [0], [0], [1], [0, 0, 1, 1], [], []>} : vector<16x32xbf16>, vector<32x96xbf16>, vector<16x96xf32> -> vector<16x96xf32>
    %43 = vector.broadcast %13 : vector<1x96xf32> to vector<16x96xf32>
    %44 = arith.addf %42, %43 : vector<16x96xf32>
    %45 = vector.extract_strided_slice %44 {offsets = [0, 0], sizes = [16, 16], strides = [1, 1]} : vector<16x96xf32> to vector<16x16xf32>
    %46 = vector.shape_cast %45 : vector<16x16xf32> to vector<2x8x16xf32>
    %47 = arith.truncf %46 : vector<2x8x16xf32> to vector<2x8x16xbf16>
    %48 = vector.extract_strided_slice %44 {offsets = [0, 32], sizes = [16, 16], strides = [1, 1]} : vector<16x96xf32> to vector<16x16xf32>
    %49 = vector.shape_cast %48 : vector<16x16xf32> to vector<2x8x16xf32>
    %50 = arith.truncf %49 : vector<2x8x16xf32> to vector<2x8x16xbf16>
    %51 = vector.extract_strided_slice %44 {offsets = [0, 64], sizes = [16, 16], strides = [1, 1]} : vector<16x96xf32> to vector<16x16xf32>
    %52 = vector.shape_cast %51 : vector<16x16xf32> to vector<2x8x16xf32>
    %53 = arith.truncf %52 : vector<2x8x16xf32> to vector<2x8x16xbf16>
    "tpu.trace_start"() <{level = 10 : i32, message = "bqd,bkd->bqk"}> : () -> ()
    %cst_26 = arith.constant dense<0.000000e+00> : vector<2x8x8xf32>
    %54 = tpu.matmul %47, %50, %cst_26 {dimension_numbers = #tpu.dot_dimension_numbers<[2], [2], [1], [1], [0, 0, 0, 1, 1, 1], [0], [0]>} : vector<2x8x16xbf16>, vector<2x8x16xbf16>, vector<2x8x8xf32> -> vector<2x8x8xf32>
    "tpu.trace_stop"() : () -> ()
    %55 = vector.broadcast %6 : vector<2x1x8xf32> to vector<2x8x8xf32>
    %56 = arith.subf %54, %55 : vector<2x8x8xf32>
    %cst_27 = arith.constant dense<0xFF800000> : vector<2x8xf32>
    %57 = vector.multi_reduction <maximumf>, %56, %cst_27 [2] : vector<2x8x8xf32> to vector<2x8xf32>
    %58 = vector.shape_cast %57 : vector<2x8xf32> to vector<2x8x1xf32>
    %59 = vector.broadcast %58 : vector<2x8x1xf32> to vector<2x8x8xf32>
    %60 = arith.subf %56, %59 : vector<2x8x8xf32>
    %61 = math.exp %60 : vector<2x8x8xf32>
    %cst_28 = arith.constant dense<0.000000e+00> : vector<2x8xf32>
    %62 = vector.multi_reduction <add>, %61, %cst_28 [2] : vector<2x8x8xf32> to vector<2x8xf32>
    %63 = vector.shape_cast %62 : vector<2x8xf32> to vector<2x8x1xf32>
    %64 = tpu.reciprocal %63 {approx = true} : vector<2x8x1xf32> -> vector<2x8x1xf32>
    %65 = vector.broadcast %64 : vector<2x8x1xf32> to vector<2x8x8xf32>
    %66 = arith.mulf %61, %65 : vector<2x8x8xf32>
    %67 = arith.truncf %66 : vector<2x8x8xf32> to vector<2x8x8xbf16>
    "tpu.trace_start"() <{level = 10 : i32, message = "bqk,bkd->bqd"}> : () -> ()
    %cst_29 = arith.constant dense<0.000000e+00> : vector<2x8x16xf32>
    %68 = tpu.matmul %67, %53, %cst_29 {dimension_numbers = #tpu.dot_dimension_numbers<[2], [1], [1], [2], [0, 0, 0, 1, 1, 2], [0], [0]>} : vector<2x8x8xbf16>, vector<2x8x16xbf16>, vector<2x8x16xf32> -> vector<2x8x16xf32>
    "tpu.trace_stop"() : () -> ()
    %69 = vector.shape_cast %68 : vector<2x8x16xf32> to vector<16x16xf32>
    %70 = vector.extract_strided_slice %44 {offsets = [0, 16], sizes = [16, 16], strides = [1, 1]} : vector<16x96xf32> to vector<16x16xf32>
    %71 = vector.shape_cast %70 : vector<16x16xf32> to vector<2x8x16xf32>
    %72 = arith.truncf %71 : vector<2x8x16xf32> to vector<2x8x16xbf16>
    %73 = vector.extract_strided_slice %44 {offsets = [0, 48], sizes = [16, 16], strides = [1, 1]} : vector<16x96xf32> to vector<16x16xf32>
    %74 = vector.shape_cast %73 : vector<16x16xf32> to vector<2x8x16xf32>
    %75 = arith.truncf %74 : vector<2x8x16xf32> to vector<2x8x16xbf16>
    %76 = vector.extract_strided_slice %44 {offsets = [0, 80], sizes = [16, 16], strides = [1, 1]} : vector<16x96xf32> to vector<16x16xf32>
    %77 = vector.shape_cast %76 : vector<16x16xf32> to vector<2x8x16xf32>
    %78 = arith.truncf %77 : vector<2x8x16xf32> to vector<2x8x16xbf16>
    "tpu.trace_start"() <{level = 10 : i32, message = "bqd,bkd->bqk"}> : () -> ()
    %cst_30 = arith.constant dense<0.000000e+00> : vector<2x8x8xf32>
    %79 = tpu.matmul %72, %75, %cst_30 {dimension_numbers = #tpu.dot_dimension_numbers<[2], [2], [1], [1], [0, 0, 0, 1, 1, 1], [0], [0]>} : vector<2x8x16xbf16>, vector<2x8x16xbf16>, vector<2x8x8xf32> -> vector<2x8x8xf32>
    "tpu.trace_stop"() : () -> ()
    %80 = vector.broadcast %6 : vector<2x1x8xf32> to vector<2x8x8xf32>
    %81 = arith.subf %79, %80 : vector<2x8x8xf32>
    %cst_31 = arith.constant dense<0xFF800000> : vector<2x8xf32>
    %82 = vector.multi_reduction <maximumf>, %81, %cst_31 [2] : vector<2x8x8xf32> to vector<2x8xf32>
    %83 = vector.shape_cast %82 : vector<2x8xf32> to vector<2x8x1xf32>
    %84 = vector.broadcast %83 : vector<2x8x1xf32> to vector<2x8x8xf32>
    %85 = arith.subf %81, %84 : vector<2x8x8xf32>
    %86 = math.exp %85 : vector<2x8x8xf32>
    %cst_32 = arith.constant dense<0.000000e+00> : vector<2x8xf32>
    %87 = vector.multi_reduction <add>, %86, %cst_32 [2] : vector<2x8x8xf32> to vector<2x8xf32>
    %88 = vector.shape_cast %87 : vector<2x8xf32> to vector<2x8x1xf32>
    %89 = tpu.reciprocal %88 {approx = true} : vector<2x8x1xf32> -> vector<2x8x1xf32>
    %90 = vector.broadcast %89 : vector<2x8x1xf32> to vector<2x8x8xf32>
    %91 = arith.mulf %86, %90 : vector<2x8x8xf32>
    %92 = arith.truncf %91 : vector<2x8x8xf32> to vector<2x8x8xbf16>
    "tpu.trace_start"() <{level = 10 : i32, message = "bqk,bkd->bqd"}> : () -> ()
    %cst_33 = arith.constant dense<0.000000e+00> : vector<2x8x16xf32>
    %93 = tpu.matmul %92, %78, %cst_33 {dimension_numbers = #tpu.dot_dimension_numbers<[2], [1], [1], [2], [0, 0, 0, 1, 1, 2], [0], [0]>} : vector<2x8x8xbf16>, vector<2x8x16xbf16>, vector<2x8x16xf32> -> vector<2x8x16xf32>
    "tpu.trace_stop"() : () -> ()
    %94 = vector.shape_cast %93 : vector<2x8x16xf32> to vector<16x16xf32>
    %95 = tpu.concatenate %69, %94 in 1 : vector<16x16xf32>, vector<16x16xf32> -> vector<16x32xf32>
    %96 = arith.truncf %95 : vector<16x32xf32> to vector<16x32xbf16>
    %cst_34 = arith.constant dense<0.000000e+00> : vector<16x32xf32>
    %97 = tpu.matmul %96, %8, %cst_34 {dimension_numbers = #tpu.dot_dimension_numbers<[1], [0], [0], [1], [0, 0, 1, 1], [], []>} : vector<16x32xbf16>, vector<32x32xbf16>, vector<16x32xf32> -> vector<16x32xf32>
    %98 = vector.broadcast %14 : vector<1x32xf32> to vector<16x32xf32>
    %99 = arith.addf %97, %98 : vector<16x32xf32>
    %100 = arith.addf %99, %1 : vector<16x32xf32>
    %cst_35 = arith.constant dense<0.000000e+00> : vector<16xf32>
    %101 = vector.multi_reduction <add>, %100, %cst_35 [1] : vector<16x32xf32> to vector<16xf32>
    %102 = vector.shape_cast %101 : vector<16xf32> to vector<16x1xf32>
    %cst_36 = arith.constant 3.200000e+01 : f32
    %103 = vector.broadcast %cst_36 : f32 to vector<16x1xf32>
    %104 = arith.divf %102, %103 : vector<16x1xf32>
    %105 = vector.broadcast %104 : vector<16x1xf32> to vector<16x32xf32>
    %106 = arith.subf %100, %105 : vector<16x32xf32>
    %107 = arith.mulf %106, %106 : vector<16x32xf32>
    %cst_37 = arith.constant dense<0.000000e+00> : vector<16xf32>
    %108 = vector.multi_reduction <add>, %107, %cst_37 [1] : vector<16x32xf32> to vector<16xf32>
    %109 = vector.shape_cast %108 : vector<16xf32> to vector<16x1xf32>
    %cst_38 = arith.constant 3.200000e+01 : f32
    %110 = vector.broadcast %cst_38 : f32 to vector<16x1xf32>
    %111 = arith.divf %109, %110 : vector<16x1xf32>
    %112 = vector.broadcast %104 : vector<16x1xf32> to vector<16x32xf32>
    %113 = arith.subf %100, %112 : vector<16x32xf32>
    %cst_39 = arith.constant 9.99999974E-6 : f32
    %114 = vector.broadcast %cst_39 : f32 to vector<16x1xf32>
    %115 = arith.addf %111, %114 : vector<16x1xf32>
    %116 = math.rsqrt %115 : vector<16x1xf32>
    %117 = vector.broadcast %116 : vector<16x1xf32> to vector<16x32xf32>
    %118 = arith.mulf %113, %117 : vector<16x32xf32>
    %119 = vector.broadcast %15 : vector<1x32xf32> to vector<16x32xf32>
    %120 = arith.mulf %118, %119 : vector<16x32xf32>
    %121 = vector.broadcast %16 : vector<1x32xf32> to vector<16x32xf32>
    %122 = arith.addf %120, %121 : vector<16x32xf32>
    %123 = arith.truncf %122 : vector<16x32xf32> to vector<16x32xbf16>
    %cst_40 = arith.constant dense<0.000000e+00> : vector<16x64xf32>
    %124 = tpu.matmul %123, %9, %cst_40 {dimension_numbers = #tpu.dot_dimension_numbers<[1], [0], [0], [1], [0, 0, 1, 1], [], []>} : vector<16x32xbf16>, vector<32x64xbf16>, vector<16x64xf32> -> vector<16x64xf32>
    %125 = vector.broadcast %17 : vector<1x64xf32> to vector<16x64xf32>
    %126 = arith.addf %124, %125 : vector<16x64xf32>
    %cst_41 = arith.constant 0.000000e+00 : f32
    %127 = vector.broadcast %cst_41 : f32 to vector<16x64xf32>
    %128 = arith.maximumf %126, %127 : vector<16x64xf32>
    %129 = arith.truncf %128 : vector<16x64xf32> to vector<16x64xbf16>
    %cst_42 = arith.constant dense<0.000000e+00> : vector<16x32xf32>
    %130 = tpu.matmul %129, %10, %cst_42 {dimension_numbers = #tpu.dot_dimension_numbers<[1], [0], [0], [1], [0, 0, 1, 1], [], []>} : vector<16x64xbf16>, vector<64x32xbf16>, vector<16x32xf32> -> vector<16x32xf32>
    %131 = vector.broadcast %18 : vector<1x32xf32> to vector<16x32xf32>
    %132 = arith.addf %130, %131 : vector<16x32xf32>
    %133 = arith.addf %132, %100 : vector<16x32xf32>
    %134 = vector.shape_cast %133 : vector<16x32xf32> to vector<2x8x32xf32>
    %135 = vector.extract_strided_slice %134 {offsets = [0, 0, 0], sizes = [2, 1, 32], strides = [1, 1, 1]} : vector<2x8x32xf32> to vector<2x1x32xf32>
    %136 = vector.shape_cast %135 : vector<2x1x32xf32> to vector<2x32xf32>
    %137 = vector.extract_strided_slice %134 {offsets = [0, 1, 0], sizes = [2, 1, 32], strides = [1, 1, 1]} : vector<2x8x32xf32> to vector<2x1x32xf32>
    %138 = vector.shape_cast %137 : vector<2x1x32xf32> to vector<2x32xf32>
    %139 = vector.extract_strided_slice %134 {offsets = [0, 2, 0], sizes = [2, 1, 32], strides = [1, 1, 1]} : vector<2x8x32xf32> to vector<2x1x32xf32>
    %140 = vector.shape_cast %139 : vector<2x1x32xf32> to vector<2x32xf32>
    %141 = vector.extract_strided_slice %134 {offsets = [0, 3, 0], sizes = [2, 1, 32], strides = [1, 1, 1]} : vector<2x8x32xf32> to vector<2x1x32xf32>
    %142 = vector.shape_cast %141 : vector<2x1x32xf32> to vector<2x32xf32>
    %143 = vector.extract_strided_slice %134 {offsets = [0, 4, 0], sizes = [2, 1, 32], strides = [1, 1, 1]} : vector<2x8x32xf32> to vector<2x1x32xf32>
    %144 = vector.shape_cast %143 : vector<2x1x32xf32> to vector<2x32xf32>
    %145 = vector.extract_strided_slice %134 {offsets = [0, 5, 0], sizes = [2, 1, 32], strides = [1, 1, 1]} : vector<2x8x32xf32> to vector<2x1x32xf32>
    %146 = vector.shape_cast %145 : vector<2x1x32xf32> to vector<2x32xf32>
    %147 = vector.extract_strided_slice %134 {offsets = [0, 6, 0], sizes = [2, 1, 32], strides = [1, 1, 1]} : vector<2x8x32xf32> to vector<2x1x32xf32>
    %148 = vector.shape_cast %147 : vector<2x1x32xf32> to vector<2x32xf32>
    %149 = vector.extract_strided_slice %134 {offsets = [0, 7, 0], sizes = [2, 1, 32], strides = [1, 1, 1]} : vector<2x8x32xf32> to vector<2x1x32xf32>
    %150 = vector.shape_cast %149 : vector<2x1x32xf32> to vector<2x32xf32>
    %151 = tpu.concatenate %136, %138, %140, %142, %144, %146, %148, %150 in 1 : vector<2x32xf32>, vector<2x32xf32>, vector<2x32xf32>, vector<2x32xf32>, vector<2x32xf32>, vector<2x32xf32>, vector<2x32xf32>, vector<2x32xf32> -> vector<2x256xf32>
    %c0_43 = arith.constant 0 : index
    %c0_44 = arith.constant 0 : index
    %152 = vector.load %arg5[%c0_43, %c0_44] : memref<2x256xf32, #tpu.memory_space<vmem>>, vector<2x256xf32>
    tpu.vector_store %arg5[%c0_43, %c0_44], %151 {strides = array<i32>} : memref<2x256xf32, #tpu.memory_space<vmem>>, vector<2x256xf32>,
    return
  }
  func.func @transform_0(%arg0: i32) -> (i32, i32, i32) {
    %c0_i32 = arith.constant 0 : i32
    %c0_i32_0 = arith.constant 0 : i32
    %c0_i32_1 = arith.constant 0 : i32
    return %arg0, %c0_i32, %c0_i32_0 : i32, i32, i32
  }
  func.func @transform_1(%arg0: i32) -> (i32, i32, i32) {
    %c0_i32 = arith.constant 0 : i32
    %c0_i32_0 = arith.constant 0 : i32
    %c0_i32_1 = arith.constant 0 : i32
    return %arg0, %c0_i32, %c0_i32_0 : i32, i32, i32
  }
  func.func @transform_2(%arg0: i32) -> (i32, i32) {
    %c0_i32 = arith.constant 0 : i32
    %c0_i32_0 = arith.constant 0 : i32
    %c0_i32_1 = arith.constant 0 : i32
    return %c0_i32, %c0_i32_0 : i32, i32
  }
  func.func @transform_3(%arg0: i32) -> (i32, i32) {
    %c0_i32 = arith.constant 0 : i32
    %c0_i32_0 = arith.constant 0 : i32
    %c0_i32_1 = arith.constant 0 : i32
    return %c0_i32, %c0_i32_0 : i32, i32
  }
  func.func @transform_4(%arg0: i32) -> (i32, i32) {
    %c0_i32 = arith.constant 0 : i32
    %c0_i32_0 = arith.constant 0 : i32
    return %arg0, %c0_i32 : i32, i32
  }
}

</mosaic_0001>

<bundles_post_ra>
// kernel: tpu_custom_call.1
= control target key start
LH: loop header
LB: loop body
LE: loop exit
PB: predicated region body
PF: predicated region fallthrough
CT: control target
= control target key end

     0   :  { %9 = vsyncpa [#allocation3], 0  ;;  %s1502_s0 = inlined_call_operand.hbm [shape: f32[2,8,32], index: 0, kind: input, shape index: {}]   ;;  %s1503_s1 = inlined_call_operand.vmem [shape: f32[2,1,8], index: 1, kind: input, shape index: {}]   ;;  %s1504_s2 = inlined_call_operand.hbm [shape: bf16[160,96], index: 2, kind: input, shape index: {}]   ;;  %s1505_s3 = inlined_call_operand.vmem [shape: f32[8,96], index: 3, kind: input, shape index: {}]   ;;  %s1506_s4 = inlined_call_operand.hbm [shape: f32[2,256], index: 4, kind: output, shape index: {}]  }
   0x1   :  { %10 = vsyncpa [#allocation6], 0 }
   0x2   :  { %11 = vsyncpa [#allocation4], 0  ;;  %s1244_s15 = smov [#allocation2]   ;;  %s1172_s19 = scalar_lea.hbm %s1502_s0, 256 }
   0x3   :  { %s17_s16 = sshll.u32 %s1244_s15, 4  ;;  %p1173_p0 = scmp.ne.s32.totalorder %s1502_s0, %s1172_s19  ;;  %s18_s16 = int_to_ptr.vmem [resolvable:$true] %s17_s16 }
   0x4   :  { %p1176_p1 = scmp.lt.u32.totalorder %s1172_s19, %s1502_s0 }
   0x6   :  { %p1178_p2 = pnand %p1176_p1, %p1173_p0 }
   0x8   :  { %1181 = shalt.err (!%p1178_p2)
}
   0x9   :  { %s1182_s24 = scalar_lea.vmem %s18_s16, 256  ;;  %p1187_p4 = scmp.lt.s32.totalorder %s18_s16, %s18_s16 }
   0xa   :  { %p1183_p3 = scmp.ne.s32.totalorder %s18_s16, %s1182_s24  ;;  %p1188_p5 = scmp.lt.s32.totalorder %s1182_s24, %s1182_s24 }
   0xc   :  { %p1189_p6 = por %p1188_p5, %p1187_p4 }
   0xe   :  { %p1190_p7 = pnand %p1189_p6, %p1183_p3 }
  0x10   :  { %1193 = shalt.err (!%p1190_p7)
}
  0x11   :  { %s1245_s25 = smov 128   ;;  %s1246_s26 = smov 8  }
  0x12   :  { %23 = dma.hbm_to_vmem [thread:$0]  %s1502_s0, 256, %s18_s16, [#allocation3], %s1245_s25, %s1245_s25, %s1246_s26  }
  0x13   :  { %s1247_s29 = smov [#allocation5]   ;;  %s1194_s7 = scalar_lea.hbm %s1504_s2, 1280 }
  0x14   :  { %s31_s30 = sshll.u32 %s1247_s29, 4  ;;  %p1195_p8 = scmp.ne.s32.totalorder %s1504_s2, %s1194_s7  ;;  %s32_s30 = int_to_ptr.vmem [resolvable:$true] %s31_s30 }
  0x15   :  { %p1198_p9 = scmp.lt.u32.totalorder %s1194_s7, %s1504_s2 }
  0x17   :  { %p1200_p10 = pnand %p1198_p9, %p1195_p8 }
  0x19   :  { %1203 = shalt.err (!%p1200_p10)
}
  0x1a   :  { %s1204_s12 = scalar_lea.vmem %s32_s30, 1280  ;;  %p1209_p12 = scmp.lt.s32.totalorder %s32_s30, %s32_s30 }
  0x1b   :  { %p1205_p11 = scmp.ne.s32.totalorder %s32_s30, %s1204_s12  ;;  %p1210_p13 = scmp.lt.s32.totalorder %s1204_s12, %s1204_s12 }
  0x1d   :  { %p1211_p0 = por %p1210_p13, %p1209_p12 }
  0x1f   :  { %p1212_p1 = pnand %p1211_p0, %p1205_p11 }
  0x21   :  { %1215 = shalt.err (!%p1212_p1)
}
  0x22   :  { %s1248_s0 = smov 64   ;;  %s1249_s13 = smov 4  }
  0x23   :  { %37 = dma.hbm_to_vmem [thread:$0]  %s1504_s2, 1280, %s32_s30, [#allocation6], %s1248_s0, %s1248_s0, %s1249_s13  }
  0x24   :  { %1238 = dma.done.wait [#allocation3], 256  }
  0x25   :  { %1239 = vsyncadd [#allocation3], 4294967040 }
  0x26   :  { %1240 = dma.done.wait [#allocation6], 1280  }
  0x27   :  { %1241 = vsyncadd [#allocation6], 4294966016  ;;  %vm83_vm0 = vcmask 261120   ;;  %v1310_v0 = vld [vmem:[#allocation2] sm:$0xff]  ;;  %v1312_v1 = vld [vmem:[#allocation2 + $0x8] sm:$0xff]  ;;  %v1250_v15 = vmov 0.0   ;;  %v287_v47 = vlaneseq }
  0x28   :  { %v84_v2 = vsel %vm83_vm0, %v1310_v0, 0.0  ;;  %v87_v3 = vsel %vm83_vm0, %v1312_v1, 0.0  ;;  %v1138_v14 = vld [vmem:[#allocation5] sm:$0xff]   ;;  %1034 = vmatprep.subr.bf16.mxu0 %v1250_v15  ;;  %1042 = vmatprep.subr.bf16.mxu1 %v1250_v15  ;;  %v1139_v16 = vld [vmem:[#allocation5 + $0x8] sm:$0xff]   ;;  %vm1251_vm1 = vmmov 0   ;;  %s1252_s21 = smov 96  }
  0x29   :  { %85 = vadd.xlane.f32.xlu0 %v84_v2  ;;  %1035 = vmatpush3.bf16.msra.mxu0 %v1138_v14  ;;  %v973_v25 = vld [vmem:[%s1505_s3] ss:$0 sm:$0xff]  ;;  %v974_v29 = vld [vmem:[%s1505_s3 + $0x1] ss:$0 sm:$0xff]  ;;  %v975_v34 = vld [vmem:[%s1505_s3 + $0x2] ss:$0 sm:$0xff] }
  0x2a   :  { %1038 = vmatprep.mubr.msk.bf16.mxu0 %vm1251_vm1, %v1250_v15  ;;  %1036 = vmatprep.subr.bf16.mxu0 %v1250_v15  ;;  %vm189_vm2 = vcmask 130048   ;;  %v49_v48 = vld [vmem:[%s1503_s1] sm:$0x1]  ;;  %v50_v49 = vld [vmem:[%s1503_s1 + $0x1] sm:$0x1]  ;;  %v288_v51 = vshrl.u32 %v287_v47, 7 }
  0x2b   :  { %1044 = vmatprep.mubr.msk.bf16.mxu1 %vm1251_vm1, %v1250_v15  ;;  %v51_v50 = vsub.f32 1.0, %v49_v48  ;;  %v52_v52 = vsub.f32 1.0, %v50_v49  ;;  %vm299_vm3 = vcmask 64512   ;;  %s1253_s1 = smov 80   ;;  %vm329_vm4 = vcmask 1043456   ;;  %s1254_s26 = smov 112  }
  0x2c   :  { %v289_v54 = vsub.s32 0, %v288_v51  ;;  %s1255_s27 = smov 48   ;;  %s1256_s28 = smov 16   ;;  %vm846_vm5 = vcmask 523264   ;;  %vm896_vm6 = vcmask 1041409   ;;  %vm940_vm7 = vcmask 785408  }
  0x2d   :  { %88 = vadd.xlane.f32.xlu0 %v87_v3  ;;  %1037 = vmatpush3.bf16.msra.mxu0 %v1139_v16  ;;  %v53_v53 = vmul.f32 1000000.0, %v51_v50  ;;  %v54_v55 = vmul.f32 1000000.0, %v52_v52  ;;  %s1258_s13 = smov [#allocation7]  }
  0x2e   :  { %1048 = vmatprep.subr.bf16.mxu0 %v1250_v15  ;;  %s963_s14 = sshll.u32 %s1258_s13, 4  ;;  %s964_s14 = int_to_ptr.vmem [resolvable:$true] %s963_s14 }
  0x2f   :  { %v1368_v56 = vrot.slane %v53_v53, %v289_v54  ;;  %v1370_v57 = vrot.slane %v54_v55, %v289_v54  ;;  %p1221_p3 = scmp.lt.s32.totalorder %s964_s14, %s964_s14 }
  0xb6   :  { %v86_v4 = vpop.xlane.xlu0 %85 }
  0xb7   :  { %v91_v5 = vmul.f32 0.03125, %v86_v4 }
  0xb9   :  { %v93_v6 = vsub.f32 %v1310_v0, %v91_v5 }
  0xba   :  { %v89_v7 = vpop.xlane.xlu0 %88 }
  0xbb   :  { %v92_v8 = vmul.f32 0.03125, %v89_v7  ;;  %v95_v9 = vmul.f32 %v93_v6, %v93_v6 }
  0xbd   :  { %v94_v10 = vsub.f32 %v1312_v1, %v92_v8  ;;  %v97_v11 = vsel %vm83_vm0, %v95_v9, 0.0 }
  0xbe   :  { %98 = vadd.xlane.f32.xlu1 %v97_v11 }
  0xbf   :  { %v96_v12 = vmul.f32 %v94_v10, %v94_v10 }
  0xc1   :  { %v100_v13 = vsel %vm83_vm0, %v96_v12, 0.0 }
  0xc2   :  { %101 = vadd.xlane.f32.xlu1 %v100_v13 }
 0x14b   :  { %v99_v17 = vpop.xlane.xlu1 %98 }
 0x14c   :  { %v103_v18 = vmul.f32 0.03125, %v99_v17 }
 0x14e   :  { %v105_v19 = vadd.f32 1e-05, %v103_v18 }
 0x14f   :  { %v102_v20 = vpop.xlane.xlu1 %101 }
 0x150   :  { %1148 = vrsqrt.f32 %v105_v19  ;;  %v104_v21 = vmul.f32 0.03125, %v102_v20 }
 0x152   :  { %v106_v22 = vadd.f32 1e-05, %v104_v21 }
 0x154   :  { %1150 = vrsqrt.f32 %v106_v22 }
 0x15a   :  { %v1149_v23 = vpop.eup %1148 }
 0x15b   :  { %v109_v24 = vmul.f32 %v1149_v23, %v93_v6 }
 0x15d   :  { %v115_v28 = vmul.f32 %v973_v25, %v109_v24 }
 0x15e   :  { %v1151_v26 = vpop.eup %1150 }
 0x15f   :  { %v110_v27 = vmul.f32 %v1151_v26, %v94_v10  ;;  %v121_v31 = vadd.f32 %v974_v29, %v115_v28 }
 0x161   :  { %v116_v30 = vmul.f32 %v973_v25, %v110_v27 }
 0x163   :  { %v122_v32 = vadd.f32 %v974_v29, %v116_v30 }
 0x165   :  { %v123_v33 = vpack.c.bf16 %v122_v32, %v121_v31 }
 0x167   :  { %1039 = vmatmul.mubr.msk.bf16.vlgmr.msra.gmra.mrb[0].mxu0 %vm83_vm0, %v123_v33 }
 0x168   :  { %1050 = vmatprep.mubr.msk.bf16.mxu0 %vm1251_vm1, %v1250_v15 }
 0x23a   :  { %v177_v35 = vpop.f32.mrb[0].mxu0 }
 0x23b   :  { %v178_v36 = vadd.f32 %v975_v34, %v177_v35  ;;  %v1040_v37 = vpop.f32.mrb[1].mxu0 }
 0x23c   :  { %v180_v38 = vpop.f32.mrb[2].mxu0 }
 0x23d   :  { %v1342_v39 = vpack.c.bf16 %v178_v36, %v178_v36  ;;  %v181_v40 = vadd.f32 %v975_v34, %v180_v38  ;;  %v1041_v41 = vpop.f32.mrb[3].mxu0 }
 0x23f   :  { %v1344_v42 = vpack.c.bf16 %v181_v40, %v181_v40  ;;  %187 = vrot.lane.b32.xlu0 %v1342_v39, %s1252_s21 }
 0x241   :  { %237 = vrot.lane.b32.xlu1 %v1344_v42, %s1252_s21 }
 0x2b1   :  { %v188_v43 = vpop.permute.xlu0 %187 }
 0x2b2   :  { %v194_v44 = vsel %vm189_vm2, %v188_v43, 0 }
 0x2b3   :  { %1043 = vmatpush3.bf16.xpose.msra.mxu1 %v194_v44  ;;  %v238_v45 = vpop.permute.xlu1 %237 }
 0x2b4   :  { %v243_v46 = vsel %vm189_vm2, %v238_v45, 0  ;;  %1054 = vmatprep.subr.bf16.mxu1 %v1250_v15 }
 0x2b5   :  { %1049 = vmatpush3.bf16.xpose.msra.mxu0 %v243_v46 }
 0x2b6   :  { %1060 = vmatprep.subr.bf16.mxu0 %v1250_v15 }
 0x2ba   :  { %1045 = vmatmul.mubr.msk.bf16.vlgmr.msra.gmra.mrb[0].mxu1 %vm189_vm2, %v1342_v39 }
 0x2bb   :  { %1056 = vmatprep.mubr.msk.bf16.mxu1 %vm1251_vm1, %v1250_v15 }
 0x2bc   :  { %1051 = vmatmul.mubr.msk.bf16.vlgmr.msra.gmra.mrb[4].mxu0 %vm189_vm2, %v1344_v42 }
 0x2bd   :  { %1062 = vmatprep.mubr.msk.bf16.mxu0 %vm1251_vm1, %v1250_v15 }
 0x38d   :  { %v230_v58 = vpop.f32.mrb[0].mxu1 }
 0x38e   :  { %v297_v59 = vsub.f32 %v230_v58, %v1368_v56  ;;  %v1046_v60 = vpop.f32.mrb[1].mxu1 }
 0x38f   :  { %v233_v61 = vpop.f32.mrb[2].mxu1  ;;  %v279_v62 = vpop.f32.mrb[4].mxu0 }
 0x390   :  { %v298_v63 = vsub.f32 %v279_v62, %v1370_v57  ;;  %v1047_v2 = vpop.f32.mrb[3].mxu1  ;;  %v1052_v3 = vpop.f32.mrb[5].mxu0  ;;  %v300_v4 = vsel %vm299_vm3, %v297_v59, -inf }
 0x391   :  { %301 = vmax.xlane.f32.xlu1 %v300_v4  ;;  %v282_v5 = vpop.f32.mrb[6].mxu0 }
 0x392   :  { %v1053_v6 = vpop.f32.mrb[7].mxu0  ;;  %v303_v7 = vsel %vm299_vm3, %v298_v63, -inf }
 0x393   :  { %304 = vmax.xlane.f32.xlu0 %v303_v7 }
 0x3a2   :  { %373 = vrot.lane.b32.xlu1 %v1344_v42, %s1248_s0 }
 0x3a6   :  { %423 = vrot.lane.b32.xlu1 %v1342_v39, %s1253_s1 }
 0x41e   :  { %v302_v8 = vpop.xlane.xlu1 %301 }
 0x41f   :  { %v306_v9 = vsub.f32 %v297_v59, %v302_v8 }
 0x420   :  { %v305_v10 = vpop.xlane.xlu0 %304 }
 0x421   :  { %v308_v11 = vmul.f32 1.442695, %v306_v9  ;;  %v307_v12 = vsub.f32 %v298_v63, %v305_v10 }
 0x422   :  { %v374_v13 = vpop.permute.xlu1 %373 }
 0x423   :  { %1152 = vpow2.f32 %v308_v11  ;;  %v310_v14 = vmul.f32 1.442695, %v307_v12  ;;  %v379_v16 = vsel %vm329_vm4, %v374_v13, 0 }
 0x424   :  { %1061 = vmatpush3.bf16.msra.mxu0 %v379_v16 }
 0x425   :  { %1154 = vpow2.f32 %v310_v14  ;;  %1072 = vmatprep.subr.bf16.mxu0 %v1250_v15 }
 0x426   :  { %v424_v21 = vpop.permute.xlu1 %423 }
 0x427   :  { %v429_v32 = vsel %vm189_vm2, %v424_v21, 0 }
 0x42d   :  { %v1153_v17 = vpop.eup %1152 }
 0x42e   :  { %v312_v18 = vsel %vm299_vm3, %v1153_v17, 0.0 }
 0x42f   :  { %v1155_v19 = vpop.eup %1154  ;;  %313 = vadd.xlane.f32.xlu0 %v312_v18  ;;  %v1140_v18 = vld [vmem:[#allocation5 + $0x10] sm:$0xff]  }
 0x430   :  { %v315_v20 = vsel %vm299_vm3, %v1155_v19, 0.0 }
 0x431   :  { %316 = vadd.xlane.f32.xlu1 %v315_v20 }
 0x442   :  { %473 = vrot.lane.b32.xlu1 %v1344_v42, %s1253_s1 }
 0x445   :  { %324 = vrot.lane.b32.xlu0 %v1342_v39, %s1248_s0 }
 0x446   :  { %471 = vrot.lane.b32.xlu1 %v1344_v42, %s1254_s26 }
 0x449   :  { %421 = vrot.lane.b32.xlu0 %v1342_v39, %s1254_s26 }
 0x4bc   :  { %v314_v22 = vpop.xlane.xlu0 %313 }
 0x4bd   :  { %1156 = vrcp.f32 %v314_v22 }
 0x4be   :  { %v317_v23 = vpop.xlane.xlu1 %316 }
 0x4bf   :  { %1158 = vrcp.f32 %v317_v23 }
 0x4c0   :  { %v325_v24 = vpop.permute.xlu0 %324 }
 0x4c1   :  { %v331_v25 = vsel %vm329_vm4, %v325_v24, 0 }
 0x4c2   :  { %1055 = vmatpush3.bf16.msra.mxu1 %v331_v25  ;;  %v474_v31 = vpop.permute.xlu1 %473 }
 0x4c3   :  { %1066 = vmatprep.subr.bf16.mxu1 %v1250_v15  ;;  %v479_v34 = vsel %vm189_vm2, %v474_v31, 0 }
 0x4c4   :  { %v422_v35 = vpop.permute.xlu0 %421 }
 0x4c6   :  { %v472_v36 = vpop.permute.xlu1 %471 }
 0x4c7   :  { %v1157_v26 = vpop.eup %1156 }
 0x4c8   :  { %v320_v27 = vmul.f32 %v1157_v26, %v1153_v17 }
 0x4c9   :  { %v1159_v28 = vpop.eup %1158 }
 0x4ca   :  { %v321_v29 = vmul.f32 %v1159_v28, %v1155_v19  ;;  %v322_v30 = vpack.c.bf16 %v320_v27, %v320_v27  ;;  %v1141_v19 = vld [vmem:[#allocation5 + $0x18] sm:$0xff]  }
 0x4cc   :  { %1057 = vmatmul.mubr.msk.bf16.vlgmr.msra.gmra.mrb[4].mxu1 %vm299_vm3, %v322_v30  ;;  %v323_v33 = vpack.c.bf16 %v321_v29, %v321_v29 }
 0x4cd   :  { %1067 = vmatpush3.bf16.xpose.msra.mxu1 %v429_v32  ;;  %1068 = vmatprep.mubr.msk.bf16.mxu1 %vm1251_vm1, %v1250_v15 }
 0x4ce   :  { %1063 = vmatmul.mubr.msk.bf16.vlgmr.msra.gmra.mrb[8].mxu0 %vm299_vm3, %v323_v33  ;;  %1078 = vmatprep.subr.bf16.mxu1 %v1250_v15 }
 0x4cf   :  { %1073 = vmatpush3.bf16.xpose.msra.mxu0 %v479_v34  ;;  %1074 = vmatprep.mubr.msk.bf16.mxu0 %vm1251_vm1, %v1250_v15 }
 0x4d0   :  { %1084 = vmatprep.subr.bf16.mxu0 %v1250_v15 }
 0x4d4   :  { %1069 = vmatmul.mubr.msk.bf16.vlgmr.msra.gmra.mrb[8].mxu1 %vm189_vm2, %v422_v35  ;;  %v987_v35 = vld [vmem:[%s1505_s3 + $0x3] ss:$0 sm:$0xff] }
 0x4d5   :  { %1080 = vmatprep.mubr.msk.bf16.mxu1 %vm1251_vm1, %v1250_v15 }
 0x4d6   :  { %1075 = vmatmul.mubr.msk.bf16.vlgmr.msra.gmra.mrb[12].mxu0 %vm189_vm2, %v472_v36 }
 0x4d7   :  { %1086 = vmatprep.mubr.msk.bf16.mxu0 %vm1251_vm1, %v1250_v15 }
 0x59f   :  { %v1406_v37 = vpop.f32.mrb[4].mxu1 }
 0x5a0   :  { %v1058_v38 = vpop.f32.mrb[5].mxu1 }
 0x5a1   :  { %v370_v40 = vpop.f32.mrb[6].mxu1  ;;  %v1408_v41 = vpop.f32.mrb[8].mxu0 }
 0x5a2   :  { %v1059_v43 = vpop.f32.mrb[7].mxu1  ;;  %v1064_v44 = vpop.f32.mrb[9].mxu0 }
 0x5a3   :  { %v418_v45 = vpop.f32.mrb[10].mxu0 }
 0x5a4   :  { %v1065_v46 = vpop.f32.mrb[11].mxu0 }
 0x5a7   :  { %v465_v47 = vpop.f32.mrb[8].mxu1 }
 0x5a8   :  { %v521_v48 = vsub.f32 %v465_v47, %v1368_v56  ;;  %v1070_v49 = vpop.f32.mrb[9].mxu1 }
 0x5a9   :  { %v468_v50 = vpop.f32.mrb[10].mxu1  ;;  %v515_v51 = vpop.f32.mrb[12].mxu0 }
 0x5aa   :  { %v522_v52 = vsub.f32 %v515_v51, %v1370_v57  ;;  %v1071_v53 = vpop.f32.mrb[11].mxu1  ;;  %v1076_v54 = vpop.f32.mrb[13].mxu0  ;;  %v523_v55 = vsel %vm299_vm3, %v521_v48, -inf }
 0x5ab   :  { %524 = vmax.xlane.f32.xlu0 %v523_v55  ;;  %v518_v58 = vpop.f32.mrb[14].mxu0 }
 0x5ac   :  { %v1077_v59 = vpop.f32.mrb[15].mxu0  ;;  %v526_v60 = vsel %vm299_vm3, %v522_v52, -inf  ;;  %v1142_v58 = vld [vmem:[#allocation5 + $0x20] sm:$0xff]  }
 0x5ad   :  { %527 = vmax.xlane.f32.xlu1 %v526_v60  ;;  %v1143_v59 = vld [vmem:[#allocation5 + $0x28] sm:$0xff]   ;;  %v1144_v60 = vld [vmem:[#allocation5 + $0x30] sm:$0xff]  }
 0x5be   :  { %595 = vrot.lane.b32.xlu1 %v1344_v42, %s1255_s27 }
 0x638   :  { %v525_v61 = vpop.xlane.xlu0 %524 }
 0x639   :  { %v529_v56 = vsub.f32 %v521_v48, %v525_v61  ;;  %v1145_v61 = vld [vmem:[#allocation5 + $0x38] sm:$0xff]  }
 0x63a   :  { %v528_v62 = vpop.xlane.xlu1 %527 }
 0x63b   :  { %v531_v63 = vmul.f32 1.442695, %v529_v56  ;;  %v530_v2 = vsub.f32 %v522_v52, %v528_v62 }
 0x63d   :  { %1160 = vpow2.f32 %v531_v63  ;;  %v533_v57 = vmul.f32 1.442695, %v530_v2 }
 0x63e   :  { %v596_v3 = vpop.permute.xlu1 %595 }
 0x63f   :  { %1162 = vpow2.f32 %v533_v57  ;;  %v601_v4 = vsel %vm329_vm4, %v596_v3, 0 }
 0x640   :  { %1085 = vmatpush3.bf16.msra.mxu0 %v601_v4 }
 0x641   :  { %1098 = vmatprep.subr.bf16.mxu0 %v1250_v15 }
 0x647   :  { %v1161_v5 = vpop.eup %1160 }
 0x648   :  { %v535_v6 = vsel %vm299_vm3, %v1161_v5, 0.0 }
 0x649   :  { %v1163_v7 = vpop.eup %1162  ;;  %536 = vadd.xlane.f32.xlu0 %v535_v6  ;;  %v991_v6 = vld [vmem:[%s1505_s3 + $0x4] ss:$0 sm:$0xff] }
 0x64a   :  { %v538_v42 = vsel %vm299_vm3, %v1163_v7, 0.0 }
 0x64d   :  { %539 = vadd.xlane.f32.xlu0 %v538_v42 }
 0x663   :  { %547 = vrot.lane.b32.xlu0 %v1342_v39, %s1255_s27 }
 0x6d6   :  { %v537_v8 = vpop.xlane.xlu0 %536 }
 0x6d7   :  { %1164 = vrcp.f32 %v537_v8 }
 0x6da   :  { %v540_v9 = vpop.xlane.xlu0 %539 }
 0x6db   :  { %1166 = vrcp.f32 %v540_v9  ;;  %v992_v9 = vld [vmem:[%s1505_s3 + $0x5] ss:$0 sm:$0xff] }
 0x6de   :  { %v548_v10 = vpop.permute.xlu0 %547 }
 0x6df   :  { %v553_v11 = vsel %vm329_vm4, %v548_v10, 0 }
 0x6e0   :  { %1079 = vmatpush3.bf16.msra.mxu1 %v553_v11 }
 0x6e1   :  { %v1165_v12 = vpop.eup %1164  ;;  %1090 = vmatprep.subr.bf16.mxu1 %v1250_v15 }
 0x6e2   :  { %v543_v13 = vmul.f32 %v1165_v12, %v1161_v5 }
 0x6e4   :  { %v545_v14 = vpack.c.bf16 %v543_v13, %v543_v13 }
 0x6e5   :  { %v1167_v16 = vpop.eup %1166 }
 0x6e6   :  { %v544_v17 = vmul.f32 %v1167_v16, %v1163_v7  ;;  %1081 = vmatmul.mubr.msk.bf16.vlgmr.msra.gmra.mrb[12].mxu1 %vm299_vm3, %v545_v14  ;;  %v1146_v14 = vld [vmem:[#allocation5 + $0x40] sm:$0xff]   ;;  %v1147_v16 = vld [vmem:[#allocation5 + $0x48] sm:$0xff]  }
 0x6e7   :  { %1094 = vmatprep.mubr.msk.bf16.mxu1 %vm1251_vm1, %v1250_v15  ;;  %1091 = vmatpush3.bf16.msra.mxu1 %v1140_v18 }
 0x6e8   :  { %v546_v39 = vpack.c.bf16 %v544_v17, %v544_v17  ;;  %1092 = vmatprep.subr.bf16.mxu1 %v1250_v15  ;;  %v993_v17 = vld [vmem:[%s1505_s3 + $0x6] ss:$0 sm:$0xff] }
 0x6ea   :  { %1087 = vmatmul.mubr.msk.bf16.vlgmr.msra.gmra.mrb[16].mxu0 %vm299_vm3, %v546_v39 }
 0x6eb   :  { %1102 = vmatprep.mubr.msk.bf16.mxu0 %vm1251_vm1, %v1250_v15  ;;  %1093 = vmatpush3.bf16.msra.mxu1 %v1141_v19 }
 0x6ec   :  { %1106 = vmatprep.subr.bf16.mxu1 %v1250_v15  ;;  %1099 = vmatpush3.bf16.msra.mxu0 %v1142_v58 }
 0x6ed   :  { %1100 = vmatprep.subr.bf16.mxu0 %v1250_v15 }
 0x6f0   :  { %1101 = vmatpush3.bf16.msra.mxu0 %v1143_v59 }
 0x7b9   :  { %v589_v20 = vpop.f32.mrb[12].mxu1 }
 0x7ba   :  { %v1082_v21 = vpop.f32.mrb[13].mxu1 }
 0x7bb   :  { %v592_v22 = vpop.f32.mrb[14].mxu1 }
 0x7bc   :  { %v1083_v23 = vpop.f32.mrb[15].mxu1 }
 0x7bd   :  { %v637_v24 = vpop.f32.mrb[16].mxu0 }
 0x7be   :  { %v1133_v25 = vpack.i.bf16 %v637_v24, %v589_v20  ;;  %v1088_v26 = vpop.f32.mrb[17].mxu0 }
 0x7bf   :  { %v640_v27 = vpop.f32.mrb[18].mxu0 }
 0x7c0   :  { %1134 = vrot.lane.b32.xlu1 %v1133_v25, %s1256_s28  ;;  %v1089_v28 = vpop.f32.mrb[19].mxu0 }
 0x832   :  { %v1135_v29 = vpop.permute.xlu1 %1134 }
 0x833   :  { %v1137_v30 = vunpack.i.h.bf16 %v1135_v29  ;;  %v1136_v31 = vunpack.i.l.bf16 %v1135_v29 }
 0x835   :  { %v652_v32 = vsel %vm189_vm2, %v1408_v41, %v1137_v30  ;;  %v651_v33 = vsel %vm189_vm2, %v1406_v37, %v1136_v31 }
 0x836   :  { %v653_v34 = vpack.c.bf16 %v652_v32, %v651_v33 }
 0x838   :  { %1095 = vmatmul.mubr.msk.bf16.vlgmr.msra.gmra.mrb[16].mxu1 %vm83_vm0, %v653_v34 }
 0x839   :  { %1114 = vmatprep.mubr.msk.bf16.mxu1 %vm1251_vm1, %v1250_v15  ;;  %1107 = vmatpush3.bf16.msra.mxu1 %v1144_v60 }
 0x83a   :  { %1108 = vmatprep.subr.bf16.mxu1 %v1250_v15 }
 0x83d   :  { %1109 = vmatpush3.bf16.msra.mxu1 %v1145_v61 }
 0x83e   :  { %1110 = vmatprep.subr.bf16.mxu1 %v1250_v15 }
 0x841   :  { %1111 = vmatpush3.bf16.msra.mxu1 %v1146_v14 }
 0x842   :  { %1112 = vmatprep.subr.bf16.mxu1 %v1250_v15  ;;  %v997_v15 = vld [vmem:[%s1505_s3 + $0x7] ss:$0 sm:$0xff]  ;;  %s1257_s3 = smov 32  }
 0x845   :  { %1113 = vmatpush3.bf16.msra.mxu1 %v1147_v16 }
 0x90b   :  { %v707_v36 = vpop.f32.mrb[16].mxu1 }
 0x90c   :  { %v708_v38 = vadd.f32 %v987_v35, %v707_v36  ;;  %v1096_v40 = vpop.f32.mrb[17].mxu1 }
 0x90d   :  { %v710_v43 = vpop.f32.mrb[18].mxu1 }
 0x90e   :  { %v1441_v44 = vadd.f32 %v708_v38, %v1310_v0  ;;  %v711_v41 = vadd.f32 %v987_v35, %v710_v43  ;;  %v1097_v45 = vpop.f32.mrb[19].mxu1 }
 0x910   :  { %v1444_v37 = vadd.f32 %v711_v41, %v1312_v1  ;;  %v716_v46 = vsel %vm83_vm0, %v1441_v44, 0.0 }
 0x911   :  { %717 = vadd.xlane.f32.xlu1 %v716_v46 }
 0x912   :  { %v719_v47 = vsel %vm83_vm0, %v1444_v37, 0.0 }
 0x913   :  { %720 = vadd.xlane.f32.xlu0 %v719_v47 }
 0x99e   :  { %v718_v48 = vpop.xlane.xlu1 %717 }
 0x99f   :  { %v722_v49 = vmul.f32 0.03125, %v718_v48 }
 0x9a0   :  { %v721_v50 = vpop.xlane.xlu0 %720 }
 0x9a1   :  { %v724_v51 = vsub.f32 %v1441_v44, %v722_v49  ;;  %v723_v0 = vmul.f32 0.03125, %v721_v50 }
 0x9a3   :  { %v725_v52 = vsub.f32 %v1444_v37, %v723_v0  ;;  %v726_v53 = vmul.f32 %v724_v51, %v724_v51 }
 0x9a5   :  { %v728_v1 = vsel %vm83_vm0, %v726_v53, 0.0  ;;  %v727_v54 = vmul.f32 %v725_v52, %v725_v52 }
 0x9a6   :  { %729 = vadd.xlane.f32.xlu0 %v728_v1 }
 0x9a7   :  { %v731_v55 = vsel %vm83_vm0, %v727_v54, 0.0 }
 0x9aa   :  { %732 = vadd.xlane.f32.xlu0 %v731_v55 }
 0xa33   :  { %v730_v56 = vpop.xlane.xlu0 %729 }
 0xa34   :  { %v734_v62 = vmul.f32 0.03125, %v730_v56 }
 0xa36   :  { %v736_v63 = vadd.f32 1e-05, %v734_v62 }
 0xa37   :  { %v733_v2 = vpop.xlane.xlu0 %732 }
 0xa38   :  { %1168 = vrsqrt.f32 %v736_v63  ;;  %v735_v57 = vmul.f32 0.03125, %v733_v2 }
 0xa3a   :  { %v737_v3 = vadd.f32 1e-05, %v735_v57 }
 0xa3c   :  { %1170 = vrsqrt.f32 %v737_v3 }
 0xa42   :  { %v1169_v4 = vpop.eup %1168 }
 0xa43   :  { %v740_v5 = vmul.f32 %v1169_v4, %v724_v51 }
 0xa45   :  { %v746_v42 = vmul.f32 %v991_v6, %v740_v5 }
 0xa46   :  { %v1171_v7 = vpop.eup %1170 }
 0xa47   :  { %v741_v8 = vmul.f32 %v1171_v7, %v725_v52  ;;  %v752_v11 = vadd.f32 %v992_v9, %v746_v42 }
 0xa49   :  { %v747_v10 = vmul.f32 %v991_v6, %v741_v8 }
 0xa4b   :  { %v753_v12 = vadd.f32 %v992_v9, %v747_v10 }
 0xa4d   :  { %v754_v13 = vpack.c.bf16 %v753_v12, %v752_v11 }
 0xa4f   :  { %1103 = vmatmul.mubr.msk.bf16.vlgmr.msra.gmra.mrb[20].mxu0 %vm83_vm0, %v754_v13 }
 0xb22   :  { %v808_v39 = vpop.f32.mrb[20].mxu0 }
 0xb23   :  { %v809_v18 = vadd.f32 %v993_v17, %v808_v39  ;;  %v1104_v19 = vpop.f32.mrb[21].mxu0 }
 0xb24   :  { %v811_v20 = vpop.f32.mrb[22].mxu0 }
 0xb25   :  { %v812_v21 = vadd.f32 %v993_v17, %v811_v20  ;;  %v1105_v22 = vpop.f32.mrb[23].mxu0  ;;  %v815_v23 = vmax.f32 %v809_v18, 0.0 }
 0xb27   :  { %v816_v24 = vmax.f32 %v812_v21, 0.0 }
 0xb29   :  { %v817_v25 = vpack.c.bf16 %v816_v24, %v815_v23 }
 0xb2b   :  { %1115 = vmatmul.mubr.msk.bf16.vlgmr.msra.gmra.mrb[20].mxu1 %vm846_vm5, %v817_v25 }
 0xbfe   :  { %v884_v26 = vpop.f32.mrb[20].mxu1 }
 0xbff   :  { %v885_v27 = vadd.f32 %v997_v15, %v884_v26  ;;  %v1116_v28 = vpop.f32.mrb[21].mxu1 }
 0xc00   :  { %v887_v29 = vpop.f32.mrb[22].mxu1 }
 0xc01   :  { %v891_v30 = vadd.f32 %v885_v27, %v1441_v44  ;;  %v888_v31 = vadd.f32 %v997_v15, %v887_v29  ;;  %v1117_v32 = vpop.f32.mrb[23].mxu1 }
 0xc03   :  { %v892_v33 = vadd.f32 %v888_v31, %v1444_v37  ;;  %v899_v34 = vrot.slane %v891_v30, 1  ;;  %v920_v35 = vrot.slane %v891_v30, 5  ;;  %v904_v36 = vrot.slane %v891_v30, 2 }
 0xc04   :  { %v932_v38 = vrot.slane %v891_v30, 7  ;;  %v926_v40 = vrot.slane %v891_v30, 6  ;;  %v910_v43 = vrot.slane %v891_v30, 3  ;;  %v916_v41 = vrot.slane %v891_v30, 4 }
 0xc05   :  { %v900_v45 = vsel %vm896_vm6, %v892_v33, %v899_v34  ;;  %v921_v46 = vrot.slane %v892_v33, 4  ;;  %v905_v47 = vrot.slane %v892_v33, 1  ;;  %v933_v48 = vrot.slane %v892_v33, 6 }
 0xc06   :  { %901 = vrot.lane.b32.xlu1 %v900_v45, %s1257_s3  ;;  %v927_v44 = vrot.slane %v892_v33, 5  ;;  %v911_v49 = vrot.slane %v892_v33, 2  ;;  %v895_v50 = vrot.slane %v892_v33, 7  ;;  %v917_v51 = vrot.slane %v892_v33, 3 }
 0xc07   :  { %v922_v37 = vsel %vm896_vm6, %v921_v46, %v920_v35  ;;  %v906_v0 = vsel %vm896_vm6, %v905_v47, %v904_v36  ;;  %v934_v52 = vsel %vm896_vm6, %v933_v48, %v932_v38 }
 0xc08   :  { %923 = vrot.lane.b32.xlu0 %v922_v37, %s1257_s3  ;;  %v928_v53 = vsel %vm896_vm6, %v927_v44, %v926_v40  ;;  %v912_v1 = vsel %vm896_vm6, %v911_v49, %v910_v43  ;;  %v897_v54 = vsel %vm896_vm6, %v895_v50, %v891_v30  ;;  %v918_v55 = vsel %vm896_vm6, %v917_v51, %v916_v41 }
 0xc0a   :  { %907 = vrot.lane.b32.xlu1 %v906_v0, %s1248_s0 }
 0xc0c   :  { %935 = vrot.lane.b32.xlu0 %v934_v52, %s1252_s21 }
 0xc0e   :  { %929 = vrot.lane.b32.xlu1 %v928_v53, %s1248_s0  ;;  %s1216_s0 = scalar_lea.vmem %s964_s14, 64 }
 0xc0f   :  { %p1217_p2 = scmp.ne.s32.totalorder %s964_s14, %s1216_s0  ;;  %p1222_p4 = scmp.lt.s32.totalorder %s1216_s0, %s1216_s0 }
 0xc11   :  { %p1223_p5 = por %p1222_p4, %p1221_p3 }
 0xc12   :  { %913 = vrot.lane.b32.xlu1 %v912_v1, %s1252_s21 }
 0xc13   :  { %p1224_p6 = pnand %p1223_p5, %p1217_p2 }
 0xc78   :  { %v902_v58 = vpop.permute.xlu1 %901 }
 0xc79   :  { %v938_v63 = vsel %vm83_vm0, %v897_v54, %v902_v58 }
 0xc7a   :  { %v924_v60 = vpop.permute.xlu0 %923 }
 0xc7b   :  { %v942_v56 = vsel %vm83_vm0, %v918_v55, %v924_v60 }
 0xc7c   :  { %v908_v59 = vpop.permute.xlu1 %907 }
 0xc7d   :  { %v939_v2 = vsel %vm846_vm5, %v938_v63, %v908_v59 }
 0xc7e   :  { %v936_v57 = vpop.permute.xlu0 %935 }
 0xc80   :  { %v930_v61 = vpop.permute.xlu1 %929 }
 0xc81   :  { %v943_v62 = vsel %vm846_vm5, %v942_v56, %v930_v61 }
 0xc82   :  { %v944_v4 = vsel %vm940_vm7, %v943_v62, %v936_v57 }
 0xc84   :  { %v914_v3 = vpop.permute.xlu1 %913 }
 0xc85   :  { %v941_v5 = vsel %vm940_vm7, %v939_v2, %v914_v3 }
 0xc86   :  { %v947_v6 = vcombine.low %v941_v5, %v944_v4 }
 0xc88   :  { %1003 = vst.sshfl [vmem:[#allocation7] sm:$0x33 pattern:$0x76325410] %v947_v6 }
 0xc89   :  { %1227 = shalt.err (!%p1224_p6)
}
 0xc8a   :  { %s1228_s16 = scalar_lea.hbm %s1506_s4, 64 }
 0xc8b   :  { %p1229_p7 = scmp.ne.s32.totalorder %s1506_s4, %s1228_s16  ;;  %p1232_p8 = scmp.lt.u32.totalorder %s1228_s16, %s1506_s4 }
 0xc8d   :  { %p1234_p9 = pnand %p1232_p8, %p1229_p7 }
 0xc8f   :  { %1237 = shalt.err (!%p1234_p9)
}
 0xc90   :  { %966 = dma.vmem_to_hbm [thread:$0]  %s964_s14, 64, %s1506_s4, [#allocation4]  }
 0xc91   :  { %1242 = dma.done.wait [#allocation4], 64  }
 0xc92   :  { %1243 = vsyncadd [#allocation4], 4294967232 }
 0xc93   :  { %970 = vsyncpa [#allocation3], 1 }
 0xc94   :  { %971 = vsyncpa [#allocation6], 1 }
 0xc95   :  { %972 = vsyncpa [#allocation4], 1 }

</bundles_post_ra>
